<compile_context>
chip_gen: v6e
topology: v6e:2x2x1
jax: 0.10.0
libtpu: 0.0.40
codegen_flags: <defaults>
</compile_context>

<pallas_src>
import math

import jax
import jax.numpy as jnp
from jax.experimental import pallas as pl
from jax.experimental.pallas import tpu as pltpu


_LANES = 128
_SUBLANES = 8
# ~2 MiB of payload per grid step (see header comment).  in+out, double
# buffered, that is ~8 MiB of VMEM — far under every chip's limit.
_TARGET_BLOCK_BYTES = 2 * 1024 * 1024
# Below this, pallas_call launch/pipeline overhead dominates and plain XLA is
# already at the HBM roofline.
_XLA_FALLBACK_BYTES = 4 * 1024 * 1024


def _sublane_quantum(itemsize: int) -> int:
    # Native sublane packing: f32 -> 8 rows/vreg, bf16 -> 16, int8/fp8 -> 32.
    return {1: 32, 2: 16, 4: 8}.get(itemsize, _SUBLANES)


def _drop_path_kernel(scale_ref, x_ref, o_ref):
    # scale_ref: (bt, 1[, 1]) float32 per-sample mask/keep_prob.
    # x_ref / o_ref: (bt, chunk) or (bt, tile_rows, 128).
    # Multiply in f32 (free — kernel is HBM-bound), cast once on the way out.
    o_ref[...] = (x_ref[...].astype(jnp.float32) * scale_ref[...]).astype(o_ref.dtype)


def _vmem_limit(block_vmem_bytes: int) -> int:
    # in + out, double-buffered, plus headroom; clamp to a safe range.
    return int(min(32 * 1024 * 1024, max(16 * 1024 * 1024, 8 * block_vmem_bytes)))


def _drop_path_aligned(x2, scale, B, N):
    """N % 128 == 0: dense (B, rows, 128) layout; blocks are fully lane- and
    sublane-dense for any batch size. tile_rows comes from a dtype-aware byte
    budget; small samples are packed several-per-block along batch."""
    itemsize = x2.dtype.itemsize
    sub_q = _sublane_quantum(itemsize)
    rows = N // _LANES

    budget_rows = max(
        sub_q, (_TARGET_BLOCK_BYTES // (_LANES * itemsize)) // sub_q * sub_q)
    if budget_rows >= rows:
        tile_rows = rows                                  # == full dim
        padded_rows = -(-rows // sub_q) * sub_q           # VMEM footprint per sample
        per_sample = padded_rows * _LANES * itemsize
        batch_tile = int(max(1, min(B, _TARGET_BLOCK_BYTES // per_sample)))
    else:
        tile_rows = budget_rows                           # multiple of sub_q (>= 8)
        batch_tile = 1

    x3 = x2.reshape(B, rows, _LANES)
    scale3 = scale.reshape(B, 1, 1)
    grid = (pl.cdiv(B, batch_tile), pl.cdiv(rows, tile_rows))
    padded_tr = -(-tile_rows // sub_q) * sub_q
    block_vmem = batch_tile * padded_tr * _LANES * itemsize

    out3 = pl.pallas_call(
        _drop_path_kernel,
        out_shape=jax.ShapeDtypeStruct((B, rows, _LANES), x2.dtype),
        grid=grid,
        in_specs=[
            pl.BlockSpec((batch_tile, 1, 1), lambda b, t: (b, 0, 0)),
            pl.BlockSpec((batch_tile, tile_rows, _LANES), lambda b, t: (b, t, 0)),
        ],
        out_specs=pl.BlockSpec((batch_tile, tile_rows, _LANES), lambda b, t: (b, t, 0)),
        compiler_params=pltpu.CompilerParams(
            dimension_semantics=("parallel", "parallel"),
            vmem_limit_bytes=_vmem_limit(block_vmem),
        ),
    )(scale3, x3)
    return out3.reshape(B, N)


def _drop_path_ragged(x2, scale, B, N):
    """N % 128 != 0: keep x as (B, N); chunk the lane axis in multiples of 128
    (or take the full dim) and let pl.cdiv + Pallas boundary masking absorb the
    ragged tail — no jnp.pad and no output slice, so no extra HBM passes.
    Batch rows map to sublanes."""
    itemsize = x2.dtype.itemsize
    row_q = _sublane_quantum(itemsize)

    # batch_tile must be == B or a multiple of 8; use the dtype sublane quantum
    # so vregs/VMEM stay dense for B >= row_q.
    batch_tile = B if B <= row_q else row_q
    budget_lanes = max(
        _LANES, (_TARGET_BLOCK_BYTES // (row_q * itemsize)) // _LANES * _LANES)
    if budget_lanes >= N:
        chunk = N                                          # == full dim, no tail
        if B > row_q:
            rows_fit = _TARGET_BLOCK_BYTES // max(1, N * itemsize)
            batch_tile = int(min(B, max(row_q, (rows_fit // row_q) * row_q)))
    else:
        chunk = budget_lanes                               # multiple of 128

    scale2 = scale.reshape(B, 1)
    grid = (pl.cdiv(B, batch_tile), pl.cdiv(N, chunk))
    padded_bt = -(-batch_tile // row_q) * row_q
    padded_chunk = -(-chunk // _LANES) * _LANES
    block_vmem = padded_bt * padded_chunk * itemsize

    return pl.pallas_call(
        _drop_path_kernel,
        out_shape=jax.ShapeDtypeStruct((B, N), x2.dtype),
        grid=grid,
        in_specs=[
            pl.BlockSpec((batch_tile, 1), lambda b, c: (b, 0)),
            pl.BlockSpec((batch_tile, chunk), lambda b, c: (b, c)),
        ],
        out_specs=pl.BlockSpec((batch_tile, chunk), lambda b, c: (b, c)),
        compiler_params=pltpu.CompilerParams(
            dimension_semantics=("parallel", "parallel"),
            vmem_limit_bytes=_vmem_limit(block_vmem),
        ),
    )(scale2, x2)


def drop_path(x, key, drop_prob: float = 0.0, training: bool = False, *,
              use_pallas=None):
    """Per-sample stochastic depth; same forward semantics as the PyTorch ref."""
    if not 0.0 <= drop_prob < 1.0:
        # drop_prob == 1.0 would divide by keep_prob == 0 (NaN in the reference).
        raise ValueError(f"drop_prob must be in [0, 1); got {drop_prob}")
    if drop_prob == 0.0 or not training:
        return x
    keep_prob = 1.0 - drop_prob

    B = x.shape[0]
    N = math.prod(x.shape[1:])

    # Per-sample Bernoulli(keep_prob) mask folded with 1/keep_prob, kept in f32
    # (same math as floor(keep_prob + U[0,1))).
    u = jax.random.uniform(key, (B,), dtype=jnp.float32)
    scale = jnp.floor(keep_prob + u) / keep_prob           # float32, shape (B,)

    itemsize = x.dtype.itemsize
    if use_pallas is None:
        use_pallas = x.size * itemsize >= _XLA_FALLBACK_BYTES
    if not use_pallas or N == 0:
        bshape = (B,) + (1,) * (x.ndim - 1)
        return (x.astype(jnp.float32) * scale.reshape(bshape)).astype(x.dtype)

    x2 = x.reshape(B, N)
    if N % _LANES == 0:
        out2 = _drop_path_aligned(x2, scale, B, N)
    else:
        out2 = _drop_path_ragged(x2, scale, B, N)
    return out2.reshape(x.shape)


class DropPath:
    """Mirror of the PyTorch DropPath module (drop_prob fixed at construction)."""

    def __init__(self, drop_prob=None):
        self.drop_prob = drop_prob
        self.training = True

    def __call__(self, x, key, **kwargs):
        p = 0.0 if self.drop_prob is None else self.drop_prob
        return drop_path(x, key, p, self.training, **kwargs)


if __name__ == "__main__":
    root = jax.random.PRNGKey(0)
    k_x, k_drop, k_xr, k_dropr = jax.random.split(root, 4)

    def reference(x, key, drop_prob):
        # Pure-JAX mirror of the PyTorch formula: x.div(keep_prob) * floor(keep+U).
        keep_prob = 1.0 - drop_prob
        u = jax.random.uniform(key, (x.shape[0],), dtype=jnp.float32)
        mask = jnp.floor(keep_prob + u).reshape((x.shape[0],) + (1,) * (x.ndim - 1))
        return ((x.astype(jnp.float32) / keep_prob) * mask).astype(x.dtype)

    # 1) aligned path: NCHW, C*H*W = 1024 (multiple of 128)
    B, C, H, W = 2, 4, 16, 16
    x = jax.random.normal(k_x, (B, C, H, W), dtype=jnp.float32)
    module = DropPath(drop_prob=0.3)
    module.training = True
    out = jax.block_until_ready(module(x, k_drop, use_pallas=True))  # force kernel
    ref = reference(x, k_drop, 0.3)
    assert out.shape == x.shape and out.dtype == x.dtype
    assert jnp.allclose(out, ref, rtol=1e-5, atol=1e-6), "aligned f32 mismatch"

    # 2) ragged path: C*H*W = 300 (NOT a multiple of 128) -> boundary-masked 2-D tiles
    xr = jax.random.normal(k_xr, (4, 3, 10, 10), dtype=jnp.float32)
    outr = jax.block_until_ready(drop_path(xr, k_dropr, 0.25, True, use_pallas=True))
    refr = reference(xr, k_dropr, 0.25)
    assert jnp.allclose(outr, refr, rtol=1e-5, atol=1e-6), "ragged f32 mismatch"

    # 3) bf16 aligned path (scale stays f32 inside the kernel)
    xb = x.astype(jnp.bfloat16)
    outb = jax.block_until_ready(drop_path(xb, k_drop, 0.3, True, use_pallas=True))
    refb = reference(xb, k_drop, 0.3)
    assert jnp.allclose(outb.astype(jnp.float32), refb.astype(jnp.float32),
                        rtol=1e-2, atol=1e-2), "bf16 mismatch"

    # 4) eval mode / drop_prob == 0 is identity (no kernel launch, per reference)
    module.training = False
    assert jnp.array_equal(jax.block_until_ready(module(x, k_drop)), x)

    print("KERNEL_OK")
</pallas_src>

<mosaic_0001>
module attributes {stable_mosaic.version = 11 : i64} {
  func.func @_drop_path_kernel(%arg0: i32, %arg1: i32, %arg2: memref<2x1x1xf32, #tpu.memory_space<vmem>>, %arg3: memref<2x8x128xf32, #tpu.memory_space<vmem>>, %arg4: memref<2x8x128xf32, #tpu.memory_space<vmem>>) attributes {dimension_semantics = [#tpu.dimension_semantics<parallel>, #tpu.dimension_semantics<parallel>], iteration_bounds = array<i64: 1, 1>, scalar_prefetch = 0 : i64, scratch_operands = 0 : i64, tpu.core_type = #tpu.core_type<tc>, window_params = [{transform_indices = @transform_0, window_bounds = array<i64: 2, 1, 1>}, {transform_indices = @transform_1, window_bounds = array<i64: 2, 8, 128>}, {transform_indices = @transform_2, window_bounds = array<i64: 2, 8, 128>}]} {
    %c0 = arith.constant 0 : index
    %c0_0 = arith.constant 0 : index
    %c0_1 = arith.constant 0 : index
    %0 = vector.load %arg3[%c0, %c0_0, %c0_1] : memref<2x8x128xf32, #tpu.memory_space<vmem>>, vector<2x8x128xf32>
    %c0_2 = arith.constant 0 : index
    %c0_3 = arith.constant 0 : index
    %c0_4 = arith.constant 0 : index
    %1 = vector.load %arg2[%c0_2, %c0_3, %c0_4] : memref<2x1x1xf32, #tpu.memory_space<vmem>>, vector<2x1x1xf32>
    %2 = vector.broadcast %1 : vector<2x1x1xf32> to vector<2x8x128xf32>
    %3 = arith.mulf %0, %2 : vector<2x8x128xf32>
    %c0_5 = arith.constant 0 : index
    %c0_6 = arith.constant 0 : index
    %c0_7 = arith.constant 0 : index
    %4 = vector.load %arg4[%c0_5, %c0_6, %c0_7] : memref<2x8x128xf32, #tpu.memory_space<vmem>>, vector<2x8x128xf32>
    tpu.vector_store %arg4[%c0_5, %c0_6, %c0_7], %3 {strides = array<i32>} : memref<2x8x128xf32, #tpu.memory_space<vmem>>, vector<2x8x128xf32>,
    return
  }
  func.func @transform_0(%arg0: i32, %arg1: i32) -> (i32, i32, i32) {
    %c0_i32 = arith.constant 0 : i32
    %c0_i32_0 = arith.constant 0 : i32
    %c0_i32_1 = arith.constant 0 : i32
    return %arg0, %c0_i32, %c0_i32_0 : i32, i32, i32
  }
  func.func @transform_1(%arg0: i32, %arg1: i32) -> (i32, i32, i32) {
    %c0_i32 = arith.constant 0 : i32
    %c0_i32_0 = arith.constant 0 : i32
    return %arg0, %arg1, %c0_i32 : i32, i32, i32
  }
  func.func @transform_2(%arg0: i32, %arg1: i32) -> (i32, i32, i32) {
    %c0_i32 = arith.constant 0 : i32
    %c0_i32_0 = arith.constant 0 : i32
    return %arg0, %arg1, %c0_i32 : i32, i32, i32
  }
}

</mosaic_0001>

<bundles_post_ra>
// kernel: tpu_custom_call.1
= control target key start
LH: loop header
LB: loop body
LE: loop exit
PB: predicated region body
PF: predicated region fallthrough
CT: control target
= control target key end

     0   :  { %7 = vsyncpa [#allocation3], 0  ;;  %s159_s0 = inlined_call_operand.vmem [shape: f32[2,1,1], index: 0, kind: input, shape index: {}]   ;;  %s160_s1 = inlined_call_operand.hbm [shape: f32[2,8,128], index: 1, kind: input, shape index: {}]   ;;  %s161_s2 = inlined_call_operand.hbm [shape: f32[2,8,128], index: 2, kind: output, shape index: {}]  }
   0x1   :  { %8 = vsyncpa [#allocation4], 0  ;;  %s121_s9 = smov [#allocation2]  }
   0x2   :  { %s16_s10 = sshll.u32 %s121_s9, 4  ;;  %s17_s10 = int_to_ptr.vmem [resolvable:$true] %s16_s10 }
   0x3   :  { %s85_s11 = scalar_lea.vmem %s17_s10, 256  ;;  %p90_p1 = scmp.lt.s32.totalorder %s17_s10, %s17_s10 }
   0x4   :  { %p86_p0 = scmp.ne.s32.totalorder %s17_s10, %s85_s11  ;;  %p91_p2 = scmp.lt.s32.totalorder %s85_s11, %s85_s11 }
   0x6   :  { %p92_p3 = por %p91_p2, %p90_p1 }
   0x8   :  { %p93_p4 = pnand %p92_p3, %p86_p0 }
   0xa   :  { %96 = shalt.err (!%p93_p4)
}
   0xb   :  { %s122_s12 = smov 128   ;;  %s123_s13 = smov 8  }
   0xc   :  { %22 = dma.hbm_to_vmem [thread:$0]  %s160_s1, 256, %s17_s10, [#allocation3], %s122_s12, %s122_s12, %s123_s13  }
   0xd   :  { %117 = dma.done.wait [#allocation3], 256  }
   0xe   :  { %118 = vsyncadd [#allocation3], 4294967040  ;;  %v124_v0 = vmov 0   ;;  %v69_v1 = vld [vmem:[%s159_s0] ss:$0 sm:$0xff]  ;;  %v27_v6 = vld [vmem:[#allocation2 + $0x8] sm:$0xff] }
   0xf   :  { %76 = vset.pattern.permute.xlu0 %v124_v0  ;;  %v70_v2 = vld [vmem:[%s159_s0 + $0x1] ss:$0 sm:$0xff]  ;;  %s125_s20 = smov [#allocation5]  }
  0x10   :  { %41 = vperm.xlu0 %76, %v69_v1   ;;  %v26_v3 = vld [vmem:[#allocation2] sm:$0xff]  ;;  %s57_s1 = sshll.u32 %s125_s20, 4  ;;  %s58_s1 = int_to_ptr.vmem [resolvable:$true] %s57_s1 }
  0x11   :  { %s97_s21 = scalar_lea.vmem %s58_s1, 256  ;;  %p102_p6 = scmp.lt.s32.totalorder %s58_s1, %s58_s1 }
  0x12   :  { %p98_p5 = scmp.ne.s32.totalorder %s58_s1, %s97_s21  ;;  %p103_p7 = scmp.lt.s32.totalorder %s97_s21, %s97_s21 }
  0x14   :  { %45 = vperm.xlu0 %76, %v70_v2   ;;  %p104_p8 = por %p103_p7, %p102_p6 }
  0x16   :  { %p105_p9 = pnand %p104_p8, %p98_p5 }
  0x8b   :  { %v42_v4 = vpop.permute.xlu0 %41 }
  0x8c   :  { %v48_v5 = vmul.f32 %v42_v4, %v26_v3 }
  0x8e   :  { %50 = vst [vmem:[#allocation5] sm:$0xff] %v48_v5 }
  0x8f   :  { %v46_v7 = vpop.permute.xlu0 %45 }
  0x90   :  { %v49_v8 = vmul.f32 %v46_v7, %v27_v6 }
  0x92   :  { %51 = vst [vmem:[#allocation5 + $0x8] sm:$0xff] %v49_v8 }
  0x93   :  { %108 = shalt.err (!%p105_p9)
}
  0x94   :  { %63 = dma.vmem_to_hbm [thread:$0]  %s58_s1, 256, %s161_s2, [#allocation4], %s122_s12, %s122_s12, %s123_s13  }
  0x95   :  { %119 = dma.done.wait [#allocation4], 256  }
  0x96   :  { %120 = vsyncadd [#allocation4], 4294967040 }
  0x97   :  { %67 = vsyncpa [#allocation3], 1 }
  0x98   :  { %68 = vsyncpa [#allocation4], 1 }

</bundles_post_ra>
